<compile_context>
chip_gen: v5e
topology: v5e:2x2
jax: 0.10.0
libtpu: 0.0.40
codegen_flags: <defaults>
</compile_context>

<pallas_src>
import functools

import jax
import jax.numpy as jnp
from jax.experimental import pallas as pl
from jax.experimental.pallas import tpu as pltpu


# ---------------------------------------------------------------------------
# Fused kernel: (conv_q + conv_a as one matmul) -> masked max-pool -> bias ->
#               tanh -> Linear -> Tanh -> (dropout: identity) -> Linear ->
#               LogSoftmax
# ---------------------------------------------------------------------------
def _qa_fused_kernel(slab_ref, ext_ref, wqa_ref, w1_ref, w2_ref, bias_ref,
                     o_ref, *, batch, lpq, lpa, lq_out, la_out, C, n_classes):
    # slab_ref : (batch*lpq + batch*lpa, fw*D) bf16, q-rows then a-rows;
    #            per-example rows padded to lpq/lpa (multiples of 8).
    # ext_ref  : (batch, E) f32
    # wqa_ref  : (fw*D, 2C) bf16   tap-major flat conv weights [wq | wa]
    # w1_ref   : (H, H)  bf16      combined Linear (H = 2C + E)
    # w2_ref   : (H, n_classes) bf16
    # bias_ref : (3, H) f32        row0 = [bq|ba|0], row1 = b1, row2 = [b2|0]
    # o_ref    : (batch, n_classes) f32 log-probabilities
    twoC = 2 * C

    # One MXU push covers both branches and every batch element.
    acc = jnp.dot(slab_ref[...], wqa_ref[...],
                  preferred_element_type=jnp.float32)           # (R, 2C) f32

    def masked_pool(part, lp, l_out):
        # part: (batch*lp, 2C); rows >= l_out within each example are padding.
        a3 = part.reshape(batch, lp, twoC)
        row = jax.lax.broadcasted_iota(jnp.int32, (batch, lp, twoC), 1)
        a3 = jnp.where(row < l_out, a3, -jnp.inf)
        return jnp.max(a3, axis=1)                              # (batch, 2C)

    rq = batch * lpq                                            # multiple of 8
    pooled_q = masked_pool(acc[:rq], lpq, lq_out)   # valid lanes [:C]
    pooled_a = masked_pool(acc[rq:], lpa, la_out)   # valid lanes [C:2C]

    # Pick each branch's valid half with a lane select (no lane shifts),
    # then bias + tanh once on the fused (batch, 2C) tile.
    lane = jax.lax.broadcasted_iota(jnp.int32, (batch, twoC), 1)
    conv_feat = jnp.tanh(jnp.where(lane < C, pooled_q, pooled_a)
                         + bias_ref[0:1, :twoC])                # (batch, 2C)

    # combined_feature_vector: one dot against the full w1.
    feat = jnp.concatenate([conv_feat, ext_ref[...]], axis=-1)  # (batch, H)
    H = feat.shape[-1]
    h = jnp.tanh(jnp.dot(feat.astype(jnp.bfloat16), w1_ref[...],
                         preferred_element_type=jnp.float32)
                 + bias_ref[1:2, :H])
    # dropout(p=0.5) in eval mode is the identity.
    logits = jnp.dot(h.astype(jnp.bfloat16), w2_ref[...],
                     preferred_element_type=jnp.float32) + bias_ref[2:3, :n_classes]

    m = jnp.max(logits, axis=-1, keepdims=True)
    shifted = logits - m
    lse = jnp.log(jnp.sum(jnp.exp(shifted), axis=-1, keepdims=True))
    o_ref[...] = (shifted - lse).astype(o_ref.dtype)


# ---------------------------------------------------------------------------
# Wrapper-side prep
# ---------------------------------------------------------------------------
def _prep_slab(x, fw):
    """(B, D, L) NCW -> im2col slab (B*lp_pad, fw*D); rows padded to mult of 8."""
    B, D, L = x.shape
    pad = fw - 1
    l_out = L + fw - 1                       # Conv1d output length, padding=fw-1
    lp_pad = -(-l_out // 8) * 8              # round up to sublane multiple
    xp = jnp.pad(x, ((0, 0), (0, 0), (pad, pad)))      # (B, D, L+2pad)
    xt = jnp.transpose(xp, (0, 2, 1))                  # (B, L+2pad, D)
    taps = jnp.stack([xt[:, k:k + l_out, :] for k in range(fw)], axis=2)
    slab = taps.reshape(B, l_out, fw * D)              # col k*D+d = x_pad[t+k, d]
    slab = jnp.pad(slab, ((0, 0), (0, lp_pad - l_out), (0, 0)))
    return slab.reshape(B * lp_pad, fw * D), l_out, lp_pad


def prepare_params(params, filter_width):
    """One-time relayout + bf16 cast of the weights (hoisted out of the jit)."""
    fw = filter_width
    C, D, _ = params["wq"].shape
    H = params["w1"].shape[1]
    n_classes = params["w2"].shape[1]
    E = H - 2 * C

    def flat(w):  # (C, D, fw) -> tap-major (fw*D, C): row k*D+d <-> w[c, d, k]
        return jnp.transpose(w, (2, 1, 0)).reshape(fw * D, C)

    wqa = jnp.concatenate([flat(params["wq"]), flat(params["wa"])],
                          axis=1).astype(jnp.bfloat16)          # (fw*D, 2C)
    w1 = params["w1"].astype(jnp.bfloat16)                      # (H, H)
    w2 = params["w2"].astype(jnp.bfloat16)                      # (H, n_classes)
    row0 = jnp.concatenate([params["bq"], params["ba"],
                            jnp.zeros((E,), jnp.float32)])
    row1 = params["b1"]
    row2 = jnp.concatenate([params["b2"],
                            jnp.zeros((H - n_classes,), jnp.float32)])
    biases = jnp.stack([row0, row1, row2], axis=0)              # (3, H) f32
    return {"wqa": wqa, "w1": w1, "w2": w2, "biases": biases}


def qa_model_forward(prepped, question, answer, ext_feats):
    """question/answer: (B, D, L*) f32; ext_feats: (B, E) -> (B, n_classes)."""
    B, D, _ = question.shape
    fw = prepped["wqa"].shape[0] // D
    C = prepped["wqa"].shape[1] // 2
    n_classes = prepped["w2"].shape[1]

    slab_q, lq_out, lpq = _prep_slab(question, fw)
    slab_a, la_out, lpa = _prep_slab(answer, fw)
    slab = jnp.concatenate([slab_q, slab_a], axis=0).astype(jnp.bfloat16)
    ext = ext_feats.astype(jnp.float32)

    kern = functools.partial(_qa_fused_kernel, batch=B, lpq=lpq, lpa=lpa,
                             lq_out=lq_out, la_out=la_out, C=C,
                             n_classes=n_classes)

    def full(shape):
        return pl.BlockSpec(shape, lambda i: (0,) * len(shape))

    return pl.pallas_call(
        kern,
        out_shape=jax.ShapeDtypeStruct((B, n_classes), jnp.float32),
        grid=(1,),
        in_specs=[
            full(slab.shape), full(ext.shape),
            full(prepped["wqa"].shape), full(prepped["w1"].shape),
            full(prepped["w2"].shape), full(prepped["biases"].shape),
        ],
        out_specs=full((B, n_classes)),
        compiler_params=pltpu.CompilerParams(
            dimension_semantics=("arbitrary",),
            vmem_limit_bytes=32 * 1024 * 1024),
    )(slab, ext, prepped["wqa"], prepped["w1"], prepped["w2"],
      prepped["biases"])


def init_params(key, input_n_dim, filter_width, conv_filters, ext_feats_size,
                n_classes):
    ks = jax.random.split(key, 8)
    n_hidden = 2 * conv_filters + ext_feats_size
    s = 0.1
    return {
        # conv weights in PyTorch layout (out_channels, in_channels, kernel)
        "wq": s * jax.random.normal(ks[0], (conv_filters, input_n_dim, filter_width), jnp.float32),
        "bq": s * jax.random.normal(ks[1], (conv_filters,), jnp.float32),
        "wa": s * jax.random.normal(ks[2], (conv_filters, input_n_dim, filter_width), jnp.float32),
        "ba": s * jax.random.normal(ks[3], (conv_filters,), jnp.float32),
        # linear weights already transposed to (in, out) for x @ W
        "w1": s * jax.random.normal(ks[4], (n_hidden, n_hidden), jnp.float32),
        "b1": s * jax.random.normal(ks[5], (n_hidden,), jnp.float32),
        "w2": s * jax.random.normal(ks[6], (n_hidden, n_classes), jnp.float32),
        "b2": s * jax.random.normal(ks[7], (n_classes,), jnp.float32),
    }


# ---------------------------------------------------------------------------
# Pure-JAX f32 reference (PyTorch-faithful order: conv -> +bias -> tanh -> pool)
# ---------------------------------------------------------------------------
def _ref_conv_branch(x, w, b, fw):
    pad = fw - 1
    B, D, L = x.shape
    l_out = L + fw - 1
    x_pad = jnp.pad(x, ((0, 0), (0, 0), (pad, pad)))
    acc = jnp.zeros((B, w.shape[0], l_out), jnp.float32)
    for k in range(fw):
        acc = acc + jnp.einsum("cd,bdt->bct", w[:, :, k],
                               x_pad[:, :, k:k + l_out])
    acc = acc + b[None, :, None]
    return jnp.max(jnp.tanh(acc), axis=-1)


def qa_model_reference(params, question, answer, ext_feats, fw):
    q = _ref_conv_branch(question, params["wq"], params["bq"], fw)
    a = _ref_conv_branch(answer, params["wa"], params["ba"], fw)
    x = jnp.concatenate([q, a, ext_feats], axis=1)
    h = jnp.tanh(x @ params["w1"] + params["b1"])
    logits = h @ params["w2"] + params["b2"]
    return jax.nn.log_softmax(logits, axis=-1)


if __name__ == "__main__":
    # Small, module-consistent shapes.
    B = 2
    input_n_dim = 32     # word-embedding dim (Conv1d in_channels)
    filter_width = 3
    conv_filters = 32
    ext_feats_size = 4
    n_classes = 2
    L_q, L_a = 8, 10

    key = jax.random.PRNGKey(0)
    kq, ka, ke, kp = jax.random.split(key, 4)
    question = jax.random.normal(kq, (B, input_n_dim, L_q), jnp.float32)
    answer = jax.random.normal(ka, (B, input_n_dim, L_a), jnp.float32)
    ext_feats = jax.random.normal(ke, (B, ext_feats_size), jnp.float32)
    params = init_params(kp, input_n_dim, filter_width, conv_filters,
                         ext_feats_size, n_classes)

    prepped = prepare_params(params, filter_width)   # one-time weight relayout
    fwd = jax.jit(qa_model_forward)
    out = jax.block_until_ready(fwd(prepped, question, answer, ext_feats))

    ref = qa_model_reference(params, question, answer, ext_feats, filter_width)
    assert out.shape == (B, n_classes)
    # bf16 MXU operands vs f32 reference -> loosened tolerance.
    assert jnp.allclose(out, ref, rtol=5e-2, atol=5e-2), (out, ref)

    print("KERNEL_OK")
</pallas_src>

<mosaic_0001>
module attributes {stable_mosaic.version = 11 : i64} {
  func.func @_qa_fused_kernel(%arg0: i32, %arg1: memref<64x96xbf16, #tpu.memory_space<vmem>>, %arg2: memref<2x4xf32, #tpu.memory_space<vmem>>, %arg3: memref<96x64xbf16, #tpu.memory_space<vmem>>, %arg4: memref<68x68xbf16, #tpu.memory_space<vmem>>, %arg5: memref<68x2xbf16, #tpu.memory_space<vmem>>, %arg6: memref<3x68xf32, #tpu.memory_space<vmem>>, %arg7: memref<2x2xf32, #tpu.memory_space<vmem>>) attributes {dimension_semantics = [#tpu.dimension_semantics<arbitrary>], iteration_bounds = array<i64: 1>, scalar_prefetch = 0 : i64, scratch_operands = 0 : i64, tpu.core_type = #tpu.core_type<tc>, window_params = [{pipeline_mode = #tpu.pipeline_mode<synchronous>, transform_indices = @transform_0, window_bounds = array<i64: 64, 96>}, {pipeline_mode = #tpu.pipeline_mode<synchronous>, transform_indices = @transform_1, window_bounds = array<i64: 2, 4>}, {pipeline_mode = #tpu.pipeline_mode<synchronous>, transform_indices = @transform_2, window_bounds = array<i64: 96, 64>}, {pipeline_mode = #tpu.pipeline_mode<synchronous>, transform_indices = @transform_3, window_bounds = array<i64: 68, 68>}, {pipeline_mode = #tpu.pipeline_mode<synchronous>, transform_indices = @transform_4, window_bounds = array<i64: 68, 2>}, {pipeline_mode = #tpu.pipeline_mode<synchronous>, transform_indices = @transform_5, window_bounds = array<i64: 3, 68>}, {pipeline_mode = #tpu.pipeline_mode<synchronous>, transform_indices = @transform_6, window_bounds = array<i64: 2, 2>}]} {
    %c0 = arith.constant 0 : index
    %c0_0 = arith.constant 0 : index
    %0 = vector.load %arg1[%c0, %c0_0] : memref<64x96xbf16, #tpu.memory_space<vmem>>, vector<64x96xbf16>
    %c0_1 = arith.constant 0 : index
    %c0_2 = arith.constant 0 : index
    %1 = vector.load %arg3[%c0_1, %c0_2] : memref<96x64xbf16, #tpu.memory_space<vmem>>, vector<96x64xbf16>
    %cst = arith.constant dense<0.000000e+00> : vector<64x64xf32>
    %2 = tpu.matmul %0, %1, %cst {dimension_numbers = #tpu.dot_dimension_numbers<[1], [0], [0], [1], [0, 0, 1, 1], [], []>} : vector<64x96xbf16>, vector<96x64xbf16>, vector<64x64xf32> -> vector<64x64xf32>
    %3 = vector.extract_strided_slice %2 {offsets = [0, 0], sizes = [32, 64], strides = [1, 1]} : vector<64x64xf32> to vector<32x64xf32>
    %4 = vector.shape_cast %3 : vector<32x64xf32> to vector<2x16x64xf32>
    %5 = tpu.iota {dimensions = array<i32: 1>} : vector<2x16x64xi32>
    %c10_i32 = arith.constant 10 : i32
    %6 = vector.broadcast %c10_i32 : i32 to vector<2x16x64xi32>
    %7 = arith.cmpi slt, %5, %6 : vector<2x16x64xi32>
    %cst_3 = arith.constant 0xFF800000 : f32
    %8 = vector.broadcast %cst_3 : f32 to vector<2x16x64xf32>
    %9 = arith.select %7, %4, %8 : vector<2x16x64xi1>, vector<2x16x64xf32>
    %cst_4 = arith.constant dense<0xFF800000> : vector<2x64xf32>
    %10 = vector.multi_reduction <maximumf>, %9, %cst_4 [1] : vector<2x16x64xf32> to vector<2x64xf32>
    %11 = vector.extract_strided_slice %2 {offsets = [32, 0], sizes = [32, 64], strides = [1, 1]} : vector<64x64xf32> to vector<32x64xf32>
    %12 = vector.shape_cast %11 : vector<32x64xf32> to vector<2x16x64xf32>
    %13 = tpu.iota {dimensions = array<i32: 1>} : vector<2x16x64xi32>
    %c12_i32 = arith.constant 12 : i32
    %14 = vector.broadcast %c12_i32 : i32 to vector<2x16x64xi32>
    %15 = arith.cmpi slt, %13, %14 : vector<2x16x64xi32>
    %cst_5 = arith.constant 0xFF800000 : f32
    %16 = vector.broadcast %cst_5 : f32 to vector<2x16x64xf32>
    %17 = arith.select %15, %12, %16 : vector<2x16x64xi1>, vector<2x16x64xf32>
    %cst_6 = arith.constant dense<0xFF800000> : vector<2x64xf32>
    %18 = vector.multi_reduction <maximumf>, %17, %cst_6 [1] : vector<2x16x64xf32> to vector<2x64xf32>
    %19 = tpu.iota {dimensions = array<i32: 1>} : vector<2x64xi32>
    %c32_i32 = arith.constant 32 : i32
    %20 = vector.broadcast %c32_i32 : i32 to vector<2x64xi32>
    %21 = arith.cmpi slt, %19, %20 : vector<2x64xi32>
    %22 = arith.select %21, %10, %18 : vector<2x64xi1>, vector<2x64xf32>
    %c0_7 = arith.constant 0 : index
    %c0_8 = arith.constant 0 : index
    %23 = vector.load %arg6[%c0_7, %c0_8] : memref<3x68xf32, #tpu.memory_space<vmem>>, vector<1x64xf32>
    %24 = vector.broadcast %23 : vector<1x64xf32> to vector<2x64xf32>
    %25 = arith.addf %22, %24 : vector<2x64xf32>
    %26 = math.tanh %25 : vector<2x64xf32>
    %c0_9 = arith.constant 0 : index
    %c0_10 = arith.constant 0 : index
    %27 = vector.load %arg2[%c0_9, %c0_10] : memref<2x4xf32, #tpu.memory_space<vmem>>, vector<2x4xf32>
    %28 = tpu.concatenate %26, %27 in 1 : vector<2x64xf32>, vector<2x4xf32> -> vector<2x68xf32>
    %29 = arith.truncf %28 : vector<2x68xf32> to vector<2x68xbf16>
    %c0_11 = arith.constant 0 : index
    %c0_12 = arith.constant 0 : index
    %30 = vector.load %arg4[%c0_11, %c0_12] : memref<68x68xbf16, #tpu.memory_space<vmem>>, vector<68x68xbf16>
    %cst_13 = arith.constant dense<0.000000e+00> : vector<2x68xf32>
    %31 = tpu.matmul %29, %30, %cst_13 {dimension_numbers = #tpu.dot_dimension_numbers<[1], [0], [0], [1], [0, 0, 1, 1], [], []>} : vector<2x68xbf16>, vector<68x68xbf16>, vector<2x68xf32> -> vector<2x68xf32>
    %c1 = arith.constant 1 : index
    %c0_14 = arith.constant 0 : index
    %32 = vector.load %arg6[%c1, %c0_14] : memref<3x68xf32, #tpu.memory_space<vmem>>, vector<1x68xf32>
    %33 = vector.broadcast %32 : vector<1x68xf32> to vector<2x68xf32>
    %34 = arith.addf %31, %33 : vector<2x68xf32>
    %35 = math.tanh %34 : vector<2x68xf32>
    %36 = arith.truncf %35 : vector<2x68xf32> to vector<2x68xbf16>
    %c0_15 = arith.constant 0 : index
    %c0_16 = arith.constant 0 : index
    %37 = vector.load %arg5[%c0_15, %c0_16] : memref<68x2xbf16, #tpu.memory_space<vmem>>, vector<68x2xbf16>
    %cst_17 = arith.constant dense<0.000000e+00> : vector<2x2xf32>
    %38 = tpu.matmul %36, %37, %cst_17 {dimension_numbers = #tpu.dot_dimension_numbers<[1], [0], [0], [1], [0, 0, 1, 1], [], []>} : vector<2x68xbf16>, vector<68x2xbf16>, vector<2x2xf32> -> vector<2x2xf32>
    %c2 = arith.constant 2 : index
    %c0_18 = arith.constant 0 : index
    %39 = vector.load %arg6[%c2, %c0_18] : memref<3x68xf32, #tpu.memory_space<vmem>>, vector<1x2xf32>
    %40 = vector.broadcast %39 : vector<1x2xf32> to vector<2x2xf32>
    %41 = arith.addf %38, %40 : vector<2x2xf32>
    %cst_19 = arith.constant dense<0xFF800000> : vector<2xf32>
    %42 = vector.multi_reduction <maximumf>, %41, %cst_19 [1] : vector<2x2xf32> to vector<2xf32>
    %43 = vector.shape_cast %42 : vector<2xf32> to vector<2x1xf32>
    %44 = vector.broadcast %43 : vector<2x1xf32> to vector<2x2xf32>
    %45 = arith.subf %41, %44 : vector<2x2xf32>
    %46 = math.exp %45 : vector<2x2xf32>
    %cst_20 = arith.constant dense<0.000000e+00> : vector<2xf32>
    %47 = vector.multi_reduction <add>, %46, %cst_20 [1] : vector<2x2xf32> to vector<2xf32>
    %48 = vector.shape_cast %47 : vector<2xf32> to vector<2x1xf32>
    %49 = math.log %48 : vector<2x1xf32>
    %50 = vector.broadcast %49 : vector<2x1xf32> to vector<2x2xf32>
    %51 = arith.subf %45, %50 : vector<2x2xf32>
    %c0_21 = arith.constant 0 : index
    %c0_22 = arith.constant 0 : index
    %52 = vector.load %arg7[%c0_21, %c0_22] : memref<2x2xf32, #tpu.memory_space<vmem>>, vector<2x2xf32>
    tpu.vector_store %arg7[%c0_21, %c0_22], %51 {strides = array<i32>} : memref<2x2xf32, #tpu.memory_space<vmem>>, vector<2x2xf32>,
    return
  }
  func.func @transform_0(%arg0: i32) -> (i32, i32) {
    %c0_i32 = arith.constant 0 : i32
    %c0_i32_0 = arith.constant 0 : i32
    %c0_i32_1 = arith.constant 0 : i32
    return %c0_i32, %c0_i32_0 : i32, i32
  }
  func.func @transform_1(%arg0: i32) -> (i32, i32) {
    %c0_i32 = arith.constant 0 : i32
    %c0_i32_0 = arith.constant 0 : i32
    %c0_i32_1 = arith.constant 0 : i32
    return %c0_i32, %c0_i32_0 : i32, i32
  }
  func.func @transform_2(%arg0: i32) -> (i32, i32) {
    %c0_i32 = arith.constant 0 : i32
    %c0_i32_0 = arith.constant 0 : i32
    %c0_i32_1 = arith.constant 0 : i32
    return %c0_i32, %c0_i32_0 : i32, i32
  }
  func.func @transform_3(%arg0: i32) -> (i32, i32) {
    %c0_i32 = arith.constant 0 : i32
    %c0_i32_0 = arith.constant 0 : i32
    %c0_i32_1 = arith.constant 0 : i32
    return %c0_i32, %c0_i32_0 : i32, i32
  }
  func.func @transform_4(%arg0: i32) -> (i32, i32) {
    %c0_i32 = arith.constant 0 : i32
    %c0_i32_0 = arith.constant 0 : i32
    %c0_i32_1 = arith.constant 0 : i32
    return %c0_i32, %c0_i32_0 : i32, i32
  }
  func.func @transform_5(%arg0: i32) -> (i32, i32) {
    %c0_i32 = arith.constant 0 : i32
    %c0_i32_0 = arith.constant 0 : i32
    %c0_i32_1 = arith.constant 0 : i32
    return %c0_i32, %c0_i32_0 : i32, i32
  }
  func.func @transform_6(%arg0: i32) -> (i32, i32) {
    %c0_i32 = arith.constant 0 : i32
    %c0_i32_0 = arith.constant 0 : i32
    %c0_i32_1 = arith.constant 0 : i32
    return %c0_i32, %c0_i32_0 : i32, i32
  }
}

</mosaic_0001>

<bundles_post_ra>
// kernel: qa_model_forward.1
= control target key start
LH: loop header
LB: loop body
LE: loop exit
PB: predicated region body
PF: predicated region fallthrough
CT: control target
= control target key end

     0   :  { %s642_s0 = inlined_call_operand.vmem [shape: bf16[64,96], index: 0, kind: input, shape index: {}]   ;;  %s643_s1 = inlined_call_operand.vmem [shape: f32[2,4], index: 1, kind: input, shape index: {}]   ;;  %s644_s2 = inlined_call_operand.vmem [shape: bf16[96,64], index: 2, kind: input, shape index: {}]   ;;  %s645_s3 = inlined_call_operand.vmem [shape: bf16[68,68], index: 3, kind: input, shape index: {}]   ;;  %s646_s4 = inlined_call_operand.vmem [shape: bf16[68,2], index: 4, kind: input, shape index: {}]   ;;  %s647_s5 = inlined_call_operand.vmem [shape: f32[3,68], index: 5, kind: input, shape index: {}]   ;;  %s648_s6 = inlined_call_operand.hbm [shape: f32[2,2], index: 6, kind: output, shape index: {}]  }
   0x1   :  { %v454_v0 = vld [vmem:[%s644_s2 + $0x28] sm:$0xff]  ;;  %v453_v1 = vld [vmem:[%s644_s2 + $0x20] sm:$0xff] }
   0x2   :  { %116 = vmatpush.bf16.msra.mxu0 %v454_v0  ;;  %463 = vmatpush.bf16.msra.mxu3 %v454_v0 }
   0x3   :  { %11 = vsyncpa [#allocation3], 0  ;;  %v452_v2 = vld [vmem:[%s644_s2 + $0x18] sm:$0xff]  ;;  %v212_v3 = vld [vmem:[%s643_s1] sm:$0x3]  ;;  %s508_s7 = smov 64   ;;  %v143_v12 = vlaneseq }
   0x4   :  { %v451_v4 = vld [vmem:[%s644_s2 + $0x10] sm:$0xff]  ;;  %214 = vrot.lane.b32.xlu0 %v212_v3, %s508_s7  ;;  %v450_v5 = vld [vmem:[%s644_s2 + $0x8] sm:$0xff]  ;;  %v449_v6 = vld [vmem:[%s644_s2] sm:$0xff]  ;;  %vm101_vm0 = vcmask 785408   ;;  %vm261_vm1 = vcmask 1041408   ;;  %vm152_vm4 = vcmask 523264  }
   0x5   :  { %v445_v7 = vld [vmem:[%s642_s0] sm:$0xff]  ;;  %v447_v8 = vld [vmem:[%s642_s0 + $0x10] sm:$0xff]  ;;  %v446_v9 = vld [vmem:[%s642_s0 + $0x8] sm:$0xff]  ;;  %v144_v13 = vshrl.u32 %v143_v12, 7  ;;  %vm200_vm5 = vcmask 1041409   ;;  %vm257_vm7 = vcmask 556032  }
   0x6   :  { %117 = vmatpush.bf16.msra.mxu0 %v453_v1  ;;  %464 = vmatpush.bf16.msra.mxu3 %v453_v1  ;;  %v448_v10 = vld [vmem:[%s642_s0 + $0x18] sm:$0xff]  ;;  %v227_v14 = vld [vmem:[%s645_s3 + $0x20] sm:$0x3]  ;;  %v457_v26 = vld [vmem:[%s645_s3 + $0x10] sm:$0xff]  ;;  %vm337_vm8 = vcmask 9216   ;;  %s358_s2 = sshll.u32 %s648_s6, 4  ;;  %s359_s2 = int_to_ptr.hbm [resolvable:$true] %s358_s2 }
   0x7   :  { %v247_v15 = vunpack.c.l.b16 %v227_v14  ;;  %v145_v19 = vadd.s32 8, %v144_v13  ;;  %v458_v21 = vld [vmem:[%s645_s3 + $0x18] sm:$0xff]  ;;  %v456_v29 = vld [vmem:[%s645_s3 + $0x8] sm:$0xff]  ;;  %v455_v36 = vld [vmem:[%s645_s3] sm:$0xff] }
   0x8   :  { %v288_v46 = vld [vmem:[%s646_s4 + $0x20] sm:$0x3]  ;;  %v462_v61 = vld [vmem:[%s646_s4 + $0x18] sm:$0xff] }
   0x9   :  { %v252_v17 = vpack.c.b16 %v247_v15, %v247_v15  ;;  %vm147_vm2 = vcmp.lt.s32.totalorder %v145_v19, 10  ;;  %vm172_vm3 = vcmp.lt.s32.totalorder %v145_v19, 12  ;;  %v308_v48 = vunpack.c.l.b16 %v288_v46  ;;  %v471_v13 = vld [vmem:[%s647_s5] ss:$0 sm:$0xff] }
   0xa   :  { %118 = vmatpush.bf16.msra.mxu0 %v452_v2  ;;  %465 = vmatpush.bf16.msra.mxu3 %v452_v2 }
   0xb   :  { %v263_v20 = vsel %vm261_vm1, %v252_v17, 0  ;;  %v313_v53 = vpack.c.b16 %v308_v48, %v308_v48 }
   0xc   :  { %268 = vmatpush.bf16.msra.mxu1 %v263_v20 }
   0xd   :  { %v322_v58 = vsel %vm261_vm1, %v313_v53, 0 }
   0xe   :  { %119 = vmatpush.bf16.msra.mxu0 %v451_v4  ;;  %466 = vmatpush.bf16.msra.mxu3 %v451_v4  ;;  %v196_v4 = vand.u32 127, %v143_v12 }
   0xf   :  { %327 = vmatpush.bf16.msra.mxu2 %v322_v58 }
  0x10   :  { %269 = vmatpush.bf16.msra.mxu1 %v458_v21  ;;  %vm197_vm6 = vcmp.lt.s32.totalorder %v196_v4, 32  ;;  %v461_v21 = vld [vmem:[%s646_s4 + $0x10] sm:$0xff] }
  0x12   :  { %120 = vmatpush.bf16.msra.mxu0 %v450_v5  ;;  %467 = vmatpush.bf16.msra.mxu3 %v450_v5 }
  0x13   :  { %328 = vmatpush.bf16.msra.mxu2 %v462_v61 }
  0x14   :  { %270 = vmatpush.bf16.msra.mxu1 %v457_v26 }
  0x16   :  { %121 = vmatpush.bf16.msra.mxu0 %v449_v6  ;;  %468 = vmatpush.bf16.msra.mxu3 %v449_v6 }
  0x17   :  { %329 = vmatpush.bf16.msra.mxu2 %v461_v21 }
  0x18   :  { %271 = vmatpush.bf16.msra.mxu1 %v456_v29 }
  0x19   :  { %407 = vmatmul.msk.bf16.vlgmr.msra.gmra.mxu0 %vm101_vm0, %v445_v7  ;;  %409 = vmatmul.msk.bf16.vlgmr.msra.gmra.mxu3 %vm101_vm0, %v447_v8 }
  0x1c   :  { %272 = vmatpush.bf16.msra.mxu1 %v455_v36 }
  0x29   :  { %408 = vmatmul.msk.bf16.gmra.mxu0 %vm101_vm0, %v446_v9  ;;  %410 = vmatmul.msk.bf16.gmra.mxu3 %vm101_vm0, %v448_v10 }
  0x96   :  { %v123_v11 = vpop.f32.mrf.mxu0 }
  0x97   :  { %v153_v30 = vsel %vm152_vm4, %v123_v11, -inf }
  0x9c   :  { %v133_v16 = vpop.f32.mrf.mxu3 }
  0x9d   :  { %v177_v31 = vsel %vm152_vm4, %v133_v16, -inf }
  0x9e   :  { %v125_v18 = vpop.f32.mrf.mxu0 }
  0x9f   :  { %v149_v23 = vsel %vm147_vm2, %v125_v18, -inf  ;;  %v215_v18 = vpop.permute.xlu0 %214 }
  0xa0   :  { %v154_v27 = vsel %vm152_vm4, %v149_v23, -inf  ;;  %v459_v23 = vld [vmem:[%s646_s4] sm:$0xff] }
  0xa1   :  { %v155_v32 = vmax.f32 %v153_v30, %v154_v27  ;;  %v473_v30 = vld [vmem:[%s647_s5 + $0x2] ss:$0 sm:$0xff] }
  0xa3   :  { %v156_v37 = vrot.slane %v155_v32, 4 }
  0xa4   :  { %v135_v22 = vpop.f32.mrf.mxu3 }
  0xa5   :  { %v174_v24 = vsel %vm172_vm3, %v135_v22, -inf  ;;  %v157_v43 = vmax.f32 %v155_v32, %v156_v37  ;;  %v460_v22 = vld [vmem:[%s646_s4 + $0x8] sm:$0xff]  ;;  %s509_s4 = smov [#allocation2]  }
  0xa6   :  { %v128_v25 = vpop.f32.mrf.mxu0  ;;  %v178_v28 = vsel %vm152_vm4, %v174_v24, -inf  ;;  %330 = vmatpush.bf16.msra.mxu2 %v460_v22  ;;  %v472_v24 = vld [vmem:[%s647_s5 + $0x1] ss:$0 sm:$0xff]  ;;  %s356_s5 = sshll.u32 %s509_s4, 4  ;;  %s357_s5 = int_to_ptr.vmem [resolvable:$true] %s356_s5 }
  0xa7   :  { %v179_v33 = vmax.f32 %v177_v31, %v178_v28  ;;  %v162_v40 = vsel %vm152_vm4, %v128_v25, -inf  ;;  %v158_v54 = vrot.slane %v157_v43, 2 }
  0xa9   :  { %v180_v38 = vrot.slane %v179_v33, 4  ;;  %v159_v62 = vmax.f32 %v157_v43, %v158_v54 }
  0xaa   :  { %331 = vmatpush.bf16.msra.mxu2 %v459_v23 }
  0xab   :  { %v181_v44 = vmax.f32 %v179_v33, %v180_v38  ;;  %v160_v3 = vrot.slane %v159_v62, 1 }
  0xac   :  { %v138_v34 = vpop.f32.mrf.mxu3 }
  0xad   :  { %v186_v51 = vsel %vm152_vm4, %v138_v34, -inf  ;;  %v182_v55 = vrot.slane %v181_v44, 2  ;;  %v161_v9 = vmax.f32 %v159_v62, %v160_v3 }
  0xae   :  { %v130_v35 = vpop.f32.mrf.mxu0 }
  0xaf   :  { %v151_v39 = vsel %vm147_vm2, %v130_v35, -inf  ;;  %v183_v63 = vmax.f32 %v181_v44, %v182_v55 }
  0xb0   :  { %v163_v41 = vsel %vm152_vm4, %v151_v39, -inf }
  0xb1   :  { %v164_v42 = vmax.f32 %v162_v40, %v163_v41  ;;  %v184_v5 = vrot.slane %v183_v63, 1 }
  0xb3   :  { %v165_v45 = vrot.slane %v164_v42, 4  ;;  %v185_v10 = vmax.f32 %v183_v63, %v184_v5 }
  0xb4   :  { %v140_v47 = vpop.f32.mrf.mxu3 }
  0xb5   :  { %v166_v49 = vmax.f32 %v164_v42, %v165_v45  ;;  %v176_v50 = vsel %vm172_vm3, %v140_v47, -inf }
  0xb6   :  { %v187_v52 = vsel %vm152_vm4, %v176_v50, -inf }
  0xb7   :  { %v167_v56 = vrot.slane %v166_v49, 2  ;;  %v188_v57 = vmax.f32 %v186_v51, %v187_v52 }
  0xb9   :  { %v168_v59 = vmax.f32 %v166_v49, %v167_v56  ;;  %v189_v60 = vrot.slane %v188_v57, 4 }
  0xbb   :  { %v190_v0 = vmax.f32 %v188_v57, %v189_v60  ;;  %v169_v1 = vrot.slane %v168_v59, 1 }
  0xbd   :  { %v191_v2 = vrot.slane %v190_v0, 2  ;;  %v170_v7 = vmax.f32 %v168_v59, %v169_v1 }
  0xbf   :  { %v192_v6 = vmax.f32 %v190_v0, %v191_v2  ;;  %v201_v14 = vsel %vm200_vm5, %v170_v7, %v161_v9 }
  0xc1   :  { %v193_v8 = vrot.slane %v192_v6, 1 }
  0xc3   :  { %v194_v11 = vmax.f32 %v192_v6, %v193_v8 }
  0xc5   :  { %v205_v15 = vsel %vm200_vm5, %v194_v11, %v185_v10 }
  0xc6   :  { %v207_v16 = vsel %vm197_vm6, %v201_v14, %v205_v15 }
  0xc7   :  { %v210_v17 = vadd.f32 %v471_v13, %v207_v16 }
  0xc9   :  { %474 = vtanh.f32 %v210_v17 }
  0xcf   :  { %v475_v12 = vpop.eup %474 }
  0xd0   :  { %v217_v19 = vsel %vm152_vm4, %v475_v12, %v215_v18 }
  0xd1   :  { %v218_v20 = vpack.c.bf16 %v217_v19, %v217_v19 }
  0xd3   :  { %427 = vmatmul.msk.bf16.vlgmr.msra.gmra.mxu1 %vm257_vm7, %v218_v20 }
 0x150   :  { %v274_v25 = vpop.f32.mrf.mxu1 }
 0x151   :  { %v275_v26 = vadd.f32 %v472_v24, %v274_v25 }
 0x153   :  { %476 = vtanh.f32 %v275_v26 }
 0x158   :  { %v276_v27 = vpop.f32.mrf.mxu1 }
 0x159   :  { %v477_v28 = vpop.eup %476 }
 0x15a   :  { %v279_v29 = vpack.c.bf16 %v477_v28, %v477_v28 }
 0x15c   :  { %444 = vmatmul.msk.bf16.vlgmr.msra.gmra.mxu2 %vm257_vm7, %v279_v29 }
 0x1df   :  { %v333_v31 = vpop.f32.mrf.mxu2 }
 0x1e0   :  { %v334_v32 = vadd.f32 %v473_v30, %v333_v31 }
 0x1e2   :  { %v338_v33 = vsel %vm337_vm8, %v334_v32, -inf }
 0x1e3   :  { %339 = vmax.xlane.f32.xlu0 %v338_v33 }
 0x1e7   :  { %v335_v34 = vpop.f32.mrf.mxu2 }
 0x256   :  { %v340_v35 = vpop.xlane.xlu0 %339 }
 0x257   :  { %v341_v36 = vsub.f32 %v334_v32, %v340_v35 }
 0x259   :  { %v342_v37 = vmul.f32 1.442695, %v341_v36 }
 0x25b   :  { %478 = vpow2.f32 %v342_v37 }
 0x261   :  { %v479_v38 = vpop.eup %478 }
 0x262   :  { %v344_v39 = vsel %vm337_vm8, %v479_v38, 0.0 }
 0x263   :  { %345 = vadd.xlane.f32.xlu1 %v344_v39 }
 0x2d6   :  { %v346_v40 = vpop.xlane.xlu1 %345 }
 0x2d7   :  { %480 = vlog2.f32 %v346_v40 }
 0x2dd   :  { %v481_v41 = vpop.eup %480 }
 0x2de   :  { %v348_v42 = vmul.f32 0.6931472, %v481_v41 }
 0x2e0   :  { %v349_v43 = vsub.f32 %v341_v36, %v348_v42 }
 0x2e2   :  { %350 = vst.msk [vmem:[#allocation2] sm:$0x3] %vm337_vm8, %v349_v43 }
 0x2e3   :  { %361 = dma.vmem_to_hbm [thread:$0]  %s357_s5, 32, %s359_s2, [#allocation3]  }
 0x2e4   :  { %506 = dma.done.wait [#allocation3], 32  }
 0x2e5   :  { %507 = vsyncadd [#allocation3], 4294967264 }
 0x2e6   :  { %366 = vsyncpa [#allocation3], 1 }

</bundles_post_ra>
